<compile_context>
chip_gen: v6e
topology: v6e:2x2x1
jax: 0.10.0
libtpu: 0.0.40
codegen_flags: <defaults>
</compile_context>

<pallas_src>
import functools

import numpy as np

import jax
import jax.numpy as jnp
from jax.experimental import pallas as pl
from jax.experimental.pallas import tpu as pltpu


def _round_up(x, m):
    return (x + m - 1) // m * m


# ---------------------------------------------------------------------------
# Pallas kernel: fused agent step (MLP trunk + fused lane-dense heads)
# ---------------------------------------------------------------------------
def _agent_step_kernel(x_ref, w1_ref, b1_ref, wh_ref, bh_ref, out_ref, *,
                       mem_size):
    # Cast activations to the matmul dtype IN-KERNEL (hides under DMA).
    x = x_ref[...].astype(w1_ref.dtype)

    # Trunk: h = relu(x @ W1 + b1), f32 accumulation on the MXU.
    h = (jnp.dot(x, w1_ref[...], preferred_element_type=jnp.float32)
         + b1_ref[...])
    h = jnp.maximum(h, 0.0)                        # f32 elementwise (v5e-safe)

    # Fused heads: one MXU push, N padded to 128 (lane-dense output).
    y = (jnp.dot(h.astype(wh_ref.dtype), wh_ref[...],
                 preferred_element_type=jnp.float32)
         + bh_ref[...])

    # tanh applies only to the memory columns; logits/arg/pad pass through.
    # (mem_size << 128 here, so the extra EUP lanes are negligible; for large
    #  mem_size a lane-aligned static slice would remove them.)
    col = jax.lax.broadcasted_iota(jnp.int32, y.shape, 1)
    out_ref[...] = jnp.where(col < mem_size, jnp.tanh(y), y).astype(out_ref.dtype)


# ---------------------------------------------------------------------------
# One-time parameter preparation (hoisted out of the per-step path)
# ---------------------------------------------------------------------------
def prepare_params(params, *, compute_dtype=jnp.bfloat16):
    """Fuse/pad/cast the raw parameters once; reuse across rollout steps."""
    w1, b1, wm, bm, wa, ba, wg, bg = params
    in_dim, hidden = w1.shape
    mem_size, n_acts, arg_size = wm.shape[1], wa.shape[1], wg.shape[1]

    in_pad = _round_up(in_dim, 128)       # lane-dense trunk K
    hid_pad = _round_up(hidden, 128)      # lane-dense trunk N / head K
    n_heads = mem_size + n_acts + arg_size
    n_pad = _round_up(n_heads, 128)       # lane-dense head N

    w1_p = jnp.pad(w1, ((0, in_pad - in_dim),
                        (0, hid_pad - hidden))).astype(compute_dtype)
    b1_p = jnp.pad(b1, ((0, 0), (0, hid_pad - hidden))).astype(jnp.float32)
    w_heads = jnp.pad(jnp.concatenate([wm, wa, wg], axis=1),
                      ((0, hid_pad - hidden),
                       (0, n_pad - n_heads))).astype(compute_dtype)
    b_heads = jnp.pad(jnp.concatenate([bm, ba, bg], axis=1),
                      ((0, 0), (0, n_pad - n_heads))).astype(jnp.float32)

    layout = dict(in_dim=in_dim, in_pad=in_pad, hidden=hidden, hid_pad=hid_pad,
                  mem_size=mem_size, n_acts=n_acts, arg_size=arg_size,
                  n_heads=n_heads, n_pad=n_pad)
    prepped = (w1_p, b1_p, w_heads, b_heads)
    return jax.block_until_ready(prepped), layout


# ---------------------------------------------------------------------------
# Wrapper: batch-tiled, weight-resident pallas_call
# ---------------------------------------------------------------------------
def agent_step(obs, mem_in, ret_val, prepped, layout, *,
               out_dtype=jnp.bfloat16, tile_b_max=1024):
    """One agent forward step.

    obs: [B, obs_size], mem_in: [B, mem_size], ret_val: [B, ret_size] (f32)
    Returns the lane-dense fused slab [b_pad, n_pad] (out_dtype) laid out as
    mem_out | act_logits | act_arg | zero-pad.  Slice lazily at point of use
    (see split_outputs) to avoid extra HBM round trips.
    """
    w1_p, b1_p, wh_p, bh_p = prepped
    B = obs.shape[0]
    in_dim = obs.shape[1] + mem_in.shape[1] + ret_val.shape[1]
    assert in_dim == layout["in_dim"]
    in_pad, hid_pad, n_pad = layout["in_pad"], layout["hid_pad"], layout["n_pad"]
    mem_size = layout["mem_size"]

    # ---- adaptive batch tiling -------------------------------------------
    # Balanced tiles cap padding waste; force grid>=2 when B is large enough
    # so v7x's two TensorCores both get work ("parallel" axis).
    n_tiles = max(pl.cdiv(B, tile_b_max), 2 if B >= 32 else 1)
    tile_b = _round_up(pl.cdiv(B, n_tiles), 16)   # 16 covers bf16 sublane pack
    grid_b = pl.cdiv(B, tile_b)
    b_pad = grid_b * tile_b

    # ---- single concatenated, lane-padded activation (stays f32) ----------
    x = jnp.concatenate([obs, mem_in, ret_val], axis=1)
    x = jnp.pad(x, ((0, b_pad - B), (0, in_pad - in_dim)))

    # ---- explicit VMEM budget (headroom over double-buffered footprint) ---
    out_isz = np.dtype(out_dtype).itemsize
    w_isz = np.dtype(w1_p.dtype).itemsize
    vmem_bytes = (tile_b * in_pad * 4            # activation tile (f32)
                  + tile_b * n_pad * out_isz     # output tile
                  + (in_pad * hid_pad + hid_pad * n_pad) * w_isz
                  + (hid_pad + n_pad) * 4)       # biases (f32)
    vmem_limit = int(min(max(4 * vmem_bytes + (4 << 20), 32 << 20), 64 << 20))

    def row_spec(f):          # batch-tiled arrays
        return pl.BlockSpec((tile_b, f), lambda i: (i, 0))

    def full_spec(r, c):      # VMEM-resident weights/biases across the grid
        return pl.BlockSpec((r, c), lambda i: (0, 0))

    fused = pl.pallas_call(
        functools.partial(_agent_step_kernel, mem_size=mem_size),
        out_shape=jax.ShapeDtypeStruct((b_pad, n_pad), out_dtype),
        grid_spec=pltpu.PrefetchScalarGridSpec(
            num_scalar_prefetch=0,
            grid=(grid_b,),
            in_specs=[
                row_spec(in_pad),
                full_spec(in_pad, hid_pad), full_spec(1, hid_pad),
                full_spec(hid_pad, n_pad), full_spec(1, n_pad),
            ],
            out_specs=pl.BlockSpec((tile_b, n_pad), lambda i: (i, 0)),
        ),
        compiler_params=pltpu.CompilerParams(
            dimension_semantics=("parallel",),    # megacore sharding on v7x
            vmem_limit_bytes=vmem_limit),
    )(x, w1_p, b1_p, wh_p, bh_p)
    return fused


def split_outputs(fused, layout, batch):
    """Convenience split into (mem_out, act_logits, act_arg); incurs slices."""
    m, a, g = layout["mem_size"], layout["n_acts"], layout["arg_size"]
    f = fused[:batch].astype(jnp.float32)
    return f[:, :m], f[:, m:m + a], f[:, m + a:m + a + g]


# ---------------------------------------------------------------------------
# Deterministic parameter construction + pure-JAX reference + demo
# ---------------------------------------------------------------------------
def make_params(key, in_dim, hidden, mem_size, n_acts, arg_size):
    ks = jax.random.split(key, 8)
    scale = 0.1
    w1 = scale * jax.random.normal(ks[0], (in_dim, hidden), jnp.float32)
    b1 = scale * jax.random.normal(ks[1], (1, hidden), jnp.float32)
    wm = scale * jax.random.normal(ks[2], (hidden, mem_size), jnp.float32)
    bm = scale * jax.random.normal(ks[3], (1, mem_size), jnp.float32)
    wa = scale * jax.random.normal(ks[4], (hidden, n_acts), jnp.float32)
    ba = scale * jax.random.normal(ks[5], (1, n_acts), jnp.float32)
    wg = scale * jax.random.normal(ks[6], (hidden, arg_size), jnp.float32)
    bg = scale * jax.random.normal(ks[7], (1, arg_size), jnp.float32)
    return (w1, b1, wm, bm, wa, ba, wg, bg)


def reference_step(obs, mem_in, ret_val, params):
    w1, b1, wm, bm, wa, ba, wg, bg = params
    x = jnp.concatenate([obs, mem_in, ret_val], axis=-1)
    h = jnp.maximum(x @ w1 + b1, 0.0)
    return jnp.tanh(h @ wm + bm), h @ wa + ba, h @ wg + bg


if __name__ == "__main__":
    # Small synthetic env-derived sizes (cf. Agent.__init__):
    #   obs_size=16, memory=32, max_act_ret_size=4,
    #   act_names = [None] + 3 env actions -> n_acts=4, max_act_arg_size=4
    B = 2
    obs_size, mem_size, ret_size = 16, 32, 4
    n_acts, arg_size, hidden = 4, 4, 32

    key = jax.random.PRNGKey(0)
    k_obs, k_mem, k_ret, k_par = jax.random.split(key, 4)

    obs = jax.random.normal(k_obs, (B, obs_size), jnp.float32)
    mem_in = jax.random.normal(k_mem, (B, mem_size), jnp.float32)
    ret_val = jax.random.normal(k_ret, (B, ret_size), jnp.float32)

    params = make_params(k_par, obs_size + mem_size + ret_size, hidden,
                         mem_size, n_acts, arg_size)

    # One-time prep (cached across rollout steps).
    prepped, layout = prepare_params(params)

    # Per-step entry point; layout ints are compile-time constants.
    step = jax.jit(lambda o, m, r, p: agent_step(o, m, r, p, layout))

    fused = step(obs, mem_in, ret_val, prepped)
    jax.block_until_ready(fused)

    # Correctness check against a full-f32 pure-JAX reference (bf16 matmul
    # inputs + bf16 output -> loose-ish tolerance).  Slices are test-only.
    mem_out, act_logits, act_arg = split_outputs(fused, layout, B)
    ref_mem, ref_logits, ref_arg = reference_step(obs, mem_in, ret_val, params)
    assert jnp.allclose(mem_out, ref_mem, atol=6e-2), \
        float(jnp.max(jnp.abs(mem_out - ref_mem)))
    assert jnp.allclose(act_logits, ref_logits, atol=6e-2), \
        float(jnp.max(jnp.abs(act_logits - ref_logits)))
    assert jnp.allclose(act_arg, ref_arg, atol=6e-2), \
        float(jnp.max(jnp.abs(act_arg - ref_arg)))

    # act_name selection (index 0 == the terminal `None` action) — host glue,
    # done in place on the fused slab (lazy slicing, no extra copies).
    _act_idx = jnp.argmax(
        fused[:B, mem_size:mem_size + n_acts].astype(jnp.float32), axis=-1)
    jax.block_until_ready(_act_idx)

    print("KERNEL_OK")
</pallas_src>

<mosaic_0001>
module attributes {stable_mosaic.version = 11 : i64} {
  func.func @_agent_step_kernel(%arg0: i32, %arg1: memref<16x128xf32, #tpu.memory_space<vmem>>, %arg2: memref<128x128xbf16, #tpu.memory_space<vmem>>, %arg3: memref<1x128xf32, #tpu.memory_space<vmem>>, %arg4: memref<128x128xbf16, #tpu.memory_space<vmem>>, %arg5: memref<1x128xf32, #tpu.memory_space<vmem>>, %arg6: memref<16x128xbf16, #tpu.memory_space<vmem>>) attributes {dimension_semantics = [#tpu.dimension_semantics<parallel>], iteration_bounds = array<i64: 1>, scalar_prefetch = 0 : i64, scratch_operands = 0 : i64, tpu.core_type = #tpu.core_type<tc>, window_params = [{transform_indices = @transform_0, window_bounds = array<i64: 16, 128>}, {pipeline_mode = #tpu.pipeline_mode<synchronous>, transform_indices = @transform_1, window_bounds = array<i64: 128, 128>}, {pipeline_mode = #tpu.pipeline_mode<synchronous>, transform_indices = @transform_2, window_bounds = array<i64: 1, 128>}, {pipeline_mode = #tpu.pipeline_mode<synchronous>, transform_indices = @transform_3, window_bounds = array<i64: 128, 128>}, {pipeline_mode = #tpu.pipeline_mode<synchronous>, transform_indices = @transform_4, window_bounds = array<i64: 1, 128>}, {transform_indices = @transform_5, window_bounds = array<i64: 16, 128>}]} {
    %c0 = arith.constant 0 : index
    %c0_0 = arith.constant 0 : index
    %0 = vector.load %arg1[%c0, %c0_0] : memref<16x128xf32, #tpu.memory_space<vmem>>, vector<16x128xf32>
    %1 = arith.truncf %0 : vector<16x128xf32> to vector<16x128xbf16>
    %c0_1 = arith.constant 0 : index
    %c0_2 = arith.constant 0 : index
    %2 = vector.load %arg2[%c0_1, %c0_2] : memref<128x128xbf16, #tpu.memory_space<vmem>>, vector<128x128xbf16>
    %cst = arith.constant dense<0.000000e+00> : vector<16x128xf32>
    %3 = tpu.matmul %1, %2, %cst {dimension_numbers = #tpu.dot_dimension_numbers<[1], [0], [0], [1], [0, 0, 1, 1], [], []>} : vector<16x128xbf16>, vector<128x128xbf16>, vector<16x128xf32> -> vector<16x128xf32>
    %c0_3 = arith.constant 0 : index
    %c0_4 = arith.constant 0 : index
    %4 = vector.load %arg3[%c0_3, %c0_4] : memref<1x128xf32, #tpu.memory_space<vmem>>, vector<1x128xf32>
    %5 = vector.broadcast %4 : vector<1x128xf32> to vector<16x128xf32>
    %6 = arith.addf %3, %5 : vector<16x128xf32>
    %cst_5 = arith.constant 0.000000e+00 : f32
    %7 = vector.broadcast %cst_5 : f32 to vector<16x128xf32>
    %8 = arith.maximumf %6, %7 : vector<16x128xf32>
    %9 = arith.truncf %8 : vector<16x128xf32> to vector<16x128xbf16>
    %c0_6 = arith.constant 0 : index
    %c0_7 = arith.constant 0 : index
    %10 = vector.load %arg4[%c0_6, %c0_7] : memref<128x128xbf16, #tpu.memory_space<vmem>>, vector<128x128xbf16>
    %cst_8 = arith.constant dense<0.000000e+00> : vector<16x128xf32>
    %11 = tpu.matmul %9, %10, %cst_8 {dimension_numbers = #tpu.dot_dimension_numbers<[1], [0], [0], [1], [0, 0, 1, 1], [], []>} : vector<16x128xbf16>, vector<128x128xbf16>, vector<16x128xf32> -> vector<16x128xf32>
    %c0_9 = arith.constant 0 : index
    %c0_10 = arith.constant 0 : index
    %12 = vector.load %arg5[%c0_9, %c0_10] : memref<1x128xf32, #tpu.memory_space<vmem>>, vector<1x128xf32>
    %13 = vector.broadcast %12 : vector<1x128xf32> to vector<16x128xf32>
    %14 = arith.addf %11, %13 : vector<16x128xf32>
    %15 = tpu.iota {dimensions = array<i32: 1>} : vector<16x128xi32>
    %c32_i32 = arith.constant 32 : i32
    %16 = vector.broadcast %c32_i32 : i32 to vector<16x128xi32>
    %17 = arith.cmpi slt, %15, %16 : vector<16x128xi32>
    %18 = math.tanh %14 : vector<16x128xf32>
    %19 = arith.select %17, %18, %14 : vector<16x128xi1>, vector<16x128xf32>
    %20 = arith.truncf %19 : vector<16x128xf32> to vector<16x128xbf16>
    %c0_11 = arith.constant 0 : index
    %c0_12 = arith.constant 0 : index
    %21 = vector.load %arg6[%c0_11, %c0_12] : memref<16x128xbf16, #tpu.memory_space<vmem>>, vector<16x128xbf16>
    tpu.vector_store %arg6[%c0_11, %c0_12], %20 {strides = array<i32>} : memref<16x128xbf16, #tpu.memory_space<vmem>>, vector<16x128xbf16>,
    return
  }
  func.func @transform_0(%arg0: i32) -> (i32, i32) {
    %c0_i32 = arith.constant 0 : i32
    %c0_i32_0 = arith.constant 0 : i32
    return %arg0, %c0_i32 : i32, i32
  }
  func.func @transform_1(%arg0: i32) -> (i32, i32) {
    %c0_i32 = arith.constant 0 : i32
    %c0_i32_0 = arith.constant 0 : i32
    %c0_i32_1 = arith.constant 0 : i32
    return %c0_i32, %c0_i32_0 : i32, i32
  }
  func.func @transform_2(%arg0: i32) -> (i32, i32) {
    %c0_i32 = arith.constant 0 : i32
    %c0_i32_0 = arith.constant 0 : i32
    %c0_i32_1 = arith.constant 0 : i32
    return %c0_i32, %c0_i32_0 : i32, i32
  }
  func.func @transform_3(%arg0: i32) -> (i32, i32) {
    %c0_i32 = arith.constant 0 : i32
    %c0_i32_0 = arith.constant 0 : i32
    %c0_i32_1 = arith.constant 0 : i32
    return %c0_i32, %c0_i32_0 : i32, i32
  }
  func.func @transform_4(%arg0: i32) -> (i32, i32) {
    %c0_i32 = arith.constant 0 : i32
    %c0_i32_0 = arith.constant 0 : i32
    %c0_i32_1 = arith.constant 0 : i32
    return %c0_i32, %c0_i32_0 : i32, i32
  }
  func.func @transform_5(%arg0: i32) -> (i32, i32) {
    %c0_i32 = arith.constant 0 : i32
    %c0_i32_0 = arith.constant 0 : i32
    return %arg0, %c0_i32 : i32, i32
  }
}

</mosaic_0001>

<bundles_post_ra>
// kernel: _lambda_.1
= control target key start
LH: loop header
LB: loop body
LE: loop exit
PB: predicated region body
PF: predicated region fallthrough
CT: control target
= control target key end

     0   :  { %10 = vsyncpa [#allocation3], 0  ;;  %s560_s0 = inlined_call_operand.vmem [shape: f32[16,128], index: 0, kind: input, shape index: {}]   ;;  %s561_s1 = inlined_call_operand.hbm [shape: bf16[128,128], index: 1, kind: input, shape index: {}]   ;;  %s562_s2 = inlined_call_operand.vmem [shape: f32[1,128], index: 2, kind: input, shape index: {}]   ;;  %s563_s3 = inlined_call_operand.hbm [shape: bf16[128,128], index: 3, kind: input, shape index: {}]   ;;  %s564_s4 = inlined_call_operand.vmem [shape: f32[1,128], index: 4, kind: input, shape index: {}]   ;;  %s565_s5 = inlined_call_operand.hbm [shape: bf16[16,128], index: 5, kind: output, shape index: {}]  }
   0x1   :  { %11 = vsyncpa [#allocation6], 0 }
   0x2   :  { %12 = vsyncpa [#allocation4], 0  ;;  %s493_s18 = smov [#allocation2]  }
   0x3   :  { %s20_s19 = sshll.u32 %s493_s18, 4  ;;  %s21_s19 = int_to_ptr.vmem [resolvable:$true] %s20_s19 }
   0x4   :  { %s435_s20 = scalar_lea.vmem %s21_s19, 1024  ;;  %p440_p1 = scmp.lt.s32.totalorder %s21_s19, %s21_s19 }
   0x5   :  { %p436_p0 = scmp.ne.s32.totalorder %s21_s19, %s435_s20  ;;  %p441_p2 = scmp.lt.s32.totalorder %s435_s20, %s435_s20 }
   0x7   :  { %p442_p3 = por %p441_p2, %p440_p1 }
   0x9   :  { %p443_p4 = pnand %p442_p3, %p436_p0 }
   0xb   :  { %446 = shalt.err (!%p443_p4)
}
   0xc   :  { %s494_s21 = smov 64   ;;  %s495_s22 = smov 4  }
   0xd   :  { %26 = dma.hbm_to_vmem [thread:$0]  %s561_s1, 1024, %s21_s19, [#allocation3], %s494_s21, %s494_s21, %s495_s22  }
   0xe   :  { %s496_s25 = smov [#allocation5]  }
   0xf   :  { %s34_s26 = sshll.u32 %s496_s25, 4  ;;  %s35_s26 = int_to_ptr.vmem [resolvable:$true] %s34_s26 }
  0x10   :  { %s455_s27 = scalar_lea.vmem %s35_s26, 1024  ;;  %p460_p6 = scmp.lt.s32.totalorder %s35_s26, %s35_s26 }
  0x11   :  { %p456_p5 = scmp.ne.s32.totalorder %s35_s26, %s455_s27  ;;  %p461_p7 = scmp.lt.s32.totalorder %s455_s27, %s455_s27 }
  0x13   :  { %p462_p8 = por %p461_p7, %p460_p6 }
  0x15   :  { %p463_p9 = pnand %p462_p8, %p456_p5 }
  0x17   :  { %466 = shalt.err (!%p463_p9)
}
  0x18   :  { %40 = dma.hbm_to_vmem [thread:$0]  %s563_s3, 1024, %s35_s26, [#allocation6], %s494_s21, %s494_s21, %s495_s22  }
  0x19   :  { %487 = dma.done.wait [#allocation3], 1024  }
  0x1a   :  { %488 = vsyncadd [#allocation3], 4294966272 }
  0x1b   :  { %489 = dma.done.wait [#allocation6], 1024  }
  0x1c   :  { %490 = vsyncadd [#allocation6], 4294966272  ;;  %v497_v0 = vmov 0.0   ;;  %vm498_vm0 = vmmov 0   ;;  %v407_v1 = vld [vmem:[#allocation2 + $0x38] sm:$0xff]   ;;  %v408_v2 = vld [vmem:[#allocation2 + $0x30] sm:$0xff]   ;;  %v280_v37 = vlaneseq }
  0x1d   :  { %360 = vmatprep.subr.bf16.mxu0 %v497_v0  ;;  %376 = vmatprep.mubr.msk.bf16.mxu0 %vm498_vm0, %v497_v0  ;;  %v409_v3 = vld [vmem:[#allocation2 + $0x28] sm:$0xff]   ;;  %v415_v4 = vld [vmem:[#allocation5 + $0x38] sm:$0xff]   ;;  %v410_v5 = vld [vmem:[#allocation2 + $0x20] sm:$0xff]  }
  0x1e   :  { %380 = vmatprep.subr.bf16.mxu1 %v497_v0  ;;  %396 = vmatprep.mubr.msk.bf16.mxu1 %vm498_vm0, %v497_v0  ;;  %v416_v6 = vld [vmem:[#allocation5 + $0x30] sm:$0xff]   ;;  %v411_v7 = vld [vmem:[#allocation2 + $0x18] sm:$0xff]   ;;  %v417_v8 = vld [vmem:[#allocation5 + $0x28] sm:$0xff]   ;;  %v281_v38 = vand.u32 127, %v280_v37 }
  0x1f   :  { %361 = vmatpush3.bf16.msra.mxu0 %v407_v1  ;;  %381 = vmatpush3.bf16.msra.mxu1 %v415_v4  ;;  %v412_v9 = vld [vmem:[#allocation2 + $0x10] sm:$0xff]   ;;  %v418_v10 = vld [vmem:[#allocation5 + $0x20] sm:$0xff]   ;;  %v413_v11 = vld [vmem:[#allocation2 + $0x8] sm:$0xff]  }
  0x20   :  { %362 = vmatprep.subr.bf16.mxu0 %v497_v0  ;;  %382 = vmatprep.subr.bf16.mxu1 %v497_v0  ;;  %v419_v12 = vld [vmem:[#allocation5 + $0x18] sm:$0xff]   ;;  %v414_v13 = vld [vmem:[#allocation2] sm:$0xff]   ;;  %v51_v15 = vld [vmem:[%s560_s0 + $0x8] sm:$0xff]  ;;  %vm282_vm1 = vcmp.lt.s32.totalorder %v281_v38, 32 }
  0x21   :  { %v50_v14 = vld [vmem:[%s560_s0] sm:$0xff]  ;;  %v420_v17 = vld [vmem:[#allocation5 + $0x10] sm:$0xff]   ;;  %v421_v18 = vld [vmem:[#allocation5 + $0x8] sm:$0xff]  }
  0x22   :  { %v52_v16 = vpack.c.bf16 %v51_v15, %v50_v14  ;;  %v422_v19 = vld [vmem:[#allocation5] sm:$0xff]  }
  0x23   :  { %363 = vmatpush3.bf16.msra.mxu0 %v408_v2  ;;  %383 = vmatpush3.bf16.msra.mxu1 %v416_v6  ;;  %v315_v20 = vld [vmem:[%s562_s2] ss:$0 sm:$0xff]  ;;  %s499_s2 = smov [#allocation7]  }
  0x24   :  { %364 = vmatprep.subr.bf16.mxu0 %v497_v0  ;;  %384 = vmatprep.subr.bf16.mxu1 %v497_v0  ;;  %v324_v30 = vld [vmem:[%s564_s4] ss:$0 sm:$0xff]  ;;  %s302_s10 = sshll.u32 %s499_s2, 4  ;;  %s303_s10 = int_to_ptr.vmem [resolvable:$true] %s302_s10 }
  0x25   :  { %s467_s4 = scalar_lea.vmem %s303_s10, 128  ;;  %p472_p11 = scmp.lt.s32.totalorder %s303_s10, %s303_s10 }
  0x26   :  { %p468_p10 = scmp.ne.s32.totalorder %s303_s10, %s467_s4  ;;  %p473_p12 = scmp.lt.s32.totalorder %s467_s4, %s467_s4 }
  0x27   :  { %365 = vmatpush3.bf16.msra.mxu0 %v409_v3  ;;  %385 = vmatpush3.bf16.msra.mxu1 %v417_v8 }
  0x28   :  { %366 = vmatprep.subr.bf16.mxu0 %v497_v0  ;;  %386 = vmatprep.subr.bf16.mxu1 %v497_v0  ;;  %p474_p13 = por %p473_p12, %p472_p11 }
  0x2a   :  { %p475_p0 = pnand %p474_p13, %p468_p10 }
  0x2b   :  { %367 = vmatpush3.bf16.msra.mxu0 %v410_v5  ;;  %387 = vmatpush3.bf16.msra.mxu1 %v418_v10 }
  0x2c   :  { %368 = vmatprep.subr.bf16.mxu0 %v497_v0  ;;  %388 = vmatprep.subr.bf16.mxu1 %v497_v0 }
  0x2f   :  { %369 = vmatpush3.bf16.msra.mxu0 %v411_v7  ;;  %389 = vmatpush3.bf16.msra.mxu1 %v419_v12 }
  0x30   :  { %370 = vmatprep.subr.bf16.mxu0 %v497_v0  ;;  %390 = vmatprep.subr.bf16.mxu1 %v497_v0 }
  0x33   :  { %371 = vmatpush3.bf16.msra.mxu0 %v412_v9  ;;  %391 = vmatpush3.bf16.msra.mxu1 %v420_v17 }
  0x34   :  { %372 = vmatprep.subr.bf16.mxu0 %v497_v0  ;;  %392 = vmatprep.subr.bf16.mxu1 %v497_v0 }
  0x37   :  { %373 = vmatpush3.bf16.msra.mxu0 %v413_v11  ;;  %393 = vmatpush3.bf16.msra.mxu1 %v421_v18 }
  0x38   :  { %374 = vmatprep.subr.bf16.mxu0 %v497_v0  ;;  %394 = vmatprep.subr.bf16.mxu1 %v497_v0 }
  0x3b   :  { %375 = vmatpush3.bf16.msra.mxu0 %v414_v13  ;;  %395 = vmatpush3.bf16.msra.mxu1 %v422_v19 }
  0x3e   :  { %377 = vmatmul.mubr.bf16.vlgmr.msra.gmra.mxu0 %v52_v16 }
  0xfe   :  { %v158_v21 = vpop.f32.mrf.mxu0 }
  0xff   :  { %v159_v23 = vadd.f32 %v315_v20, %v158_v21 }
 0x100   :  { %v378_v22 = vpop.f32.mrf.mxu0 }
 0x101   :  { %v165_v27 = vmax.f32 %v159_v23, 0.0 }
 0x102   :  { %v161_v24 = vpop.f32.mrf.mxu0 }
 0x103   :  { %v162_v25 = vadd.f32 %v315_v20, %v161_v24 }
 0x104   :  { %v379_v26 = vpop.f32.mrf.mxu0 }
 0x105   :  { %v166_v28 = vmax.f32 %v162_v25, 0.0 }
 0x107   :  { %v167_v29 = vpack.c.bf16 %v166_v28, %v165_v27 }
 0x109   :  { %397 = vmatmul.mubr.bf16.vlgmr.msra.gmra.mxu1 %v167_v29 }
 0x1c9   :  { %v273_v31 = vpop.f32.mrf.mxu1 }
 0x1ca   :  { %v274_v32 = vadd.f32 %v324_v30, %v273_v31 }
 0x1cb   :  { %v398_v33 = vpop.f32.mrf.mxu1 }
 0x1cc   :  { %423 = vtanh.f32 %v274_v32 }
 0x1cd   :  { %v276_v34 = vpop.f32.mrf.mxu1 }
 0x1ce   :  { %v277_v35 = vadd.f32 %v324_v30, %v276_v34 }
 0x1cf   :  { %v399_v36 = vpop.f32.mrf.mxu1 }
 0x1d0   :  { %425 = vtanh.f32 %v277_v35 }
 0x1d9   :  { %v424_v39 = vpop.eup %423 }
 0x1da   :  { %v285_v41 = vsel %vm282_vm1, %v424_v39, %v274_v32 }
 0x1dd   :  { %v426_v40 = vpop.eup %425 }
 0x1de   :  { %v286_v42 = vsel %vm282_vm1, %v426_v40, %v277_v35 }
 0x1df   :  { %v340_v43 = vpack.c.bf16 %v286_v42, %v285_v41 }
 0x1e1   :  { %341 = vst [vmem:[#allocation7] sm:$0xff] %v340_v43  }
 0x1e2   :  { %478 = shalt.err (!%p475_p0)
}
 0x1e3   :  { %308 = dma.vmem_to_hbm [thread:$0]  %s303_s10, 128, %s565_s5, [#allocation4], %s494_s21, %s494_s21, %s495_s22  }
 0x1e4   :  { %491 = dma.done.wait [#allocation4], 128  }
 0x1e5   :  { %492 = vsyncadd [#allocation4], 4294967168 }
 0x1e6   :  { %312 = vsyncpa [#allocation3], 1 }
 0x1e7   :  { %313 = vsyncpa [#allocation6], 1 }
 0x1e8   :  { %314 = vsyncpa [#allocation4], 1 }

</bundles_post_ra>
